<compile_context>
chip_gen: v6e
topology: v6e:2x2x1
jax: 0.10.0
libtpu: 0.0.40
codegen_flags: <defaults>
</compile_context>

<pallas_src>
import math

import jax
import jax.numpy as jnp
from jax.experimental import pallas as pl
from jax.experimental.pallas import tpu as pltpu


# ----------------------------------------------------------------------------
# Kernels
# ----------------------------------------------------------------------------

def _scale_matmul_resident_kernel(x_ref, s_ref, o_ref):
    """y_tile = x_tile @ scale, scale fully resident (no K axis, no accumulator)."""
    o_ref[...] = jnp.dot(
        x_ref[...], s_ref[...], preferred_element_type=jnp.float32
    ).astype(o_ref.dtype)


def _scale_matvec_kernel(x_ref, s_ref, o_ref):
    """1-D scale: y_tile = sum(x_tile * scale, -1) — VPU multiply + lane reduce."""
    prod = x_ref[...].astype(jnp.float32) * s_ref[...].astype(jnp.float32)
    o_ref[...] = jnp.sum(prod, axis=1, keepdims=True).astype(o_ref.dtype)


def _scale_matmul_acc_kernel(x_ref, s_ref, o_ref, acc_ref):
    """Fallback: K-tiled matmul with f32 accumulator (scale too big for VMEM)."""
    @pl.when(pl.program_id(2) == 0)
    def _():
        acc_ref[...] = jnp.zeros_like(acc_ref)

    acc_ref[...] += jnp.dot(
        x_ref[...], s_ref[...], preferred_element_type=jnp.float32
    )

    @pl.when(pl.program_id(2) == pl.num_programs(2) - 1)
    def _():
        o_ref[...] = acc_ref[...].astype(o_ref.dtype)


# ----------------------------------------------------------------------------
# Helpers
# ----------------------------------------------------------------------------

def _round_up(v: int, m: int) -> int:
    return ((v + m - 1) // m) * m


def _pick_tm(M: int, tm_cap: int) -> int:
    """M-tile: multiple of 8 (or full M); prefer no padding and >=2 tiles."""
    tm_cap = max(8, (min(tm_cap, 2048) // 8) * 8)
    if M <= 8 or M % 8 != 0:
        if M <= tm_cap:
            return M  # single full-dim block: exempt from the sublane-8 rule, no pad
        n_tiles = pl.cdiv(M, tm_cap)
        return _round_up(pl.cdiv(M, n_tiles), 8)  # balanced, minimal M padding
    # M is a multiple of 8 and >= 16: largest mult-of-8 divisor of M that is
    # <= tm_cap and yields >= 2 tiles (keeps both v7x TensorCores busy), no pad.
    upper = max(8, (min(tm_cap, M // 2) // 8) * 8)
    for tm in range(upper, 7, -8):
        if M % tm == 0:
            return tm
    return 8


def _tiled_matmul_fallback(x2, scale2, out_dtype, *, tm=256, tn=512, tk=512):
    """Previously-validated tiled matmul with K reduction; only for huge `scale`."""
    M, K = x2.shape
    _, N = scale2.shape
    tm = min(tm, _round_up(M, 8))
    tn = min(tn, _round_up(N, 256))   # 256-multiples keep the v6e/v7x MXU full
    tk = min(tk, _round_up(K, 256))
    Mp, Kp, Np = _round_up(M, tm), _round_up(K, tk), _round_up(N, tn)

    xp = x2
    if (Mp, Kp) != (M, K):
        xp = jnp.zeros((Mp, Kp), x2.dtype).at[:M, :K].set(x2)
    sp = scale2
    if (Kp, Np) != (K, N):
        sp = jnp.zeros((Kp, Np), scale2.dtype).at[:K, :N].set(scale2)

    out = pl.pallas_call(
        _scale_matmul_acc_kernel,
        out_shape=jax.ShapeDtypeStruct((Mp, Np), out_dtype),
        grid_spec=pltpu.PrefetchScalarGridSpec(
            num_scalar_prefetch=0,
            grid=(Mp // tm, Np // tn, Kp // tk),
            in_specs=[
                pl.BlockSpec((tm, tk), lambda i, j, k: (i, k)),
                pl.BlockSpec((tk, tn), lambda i, j, k: (k, j)),
            ],
            out_specs=pl.BlockSpec((tm, tn), lambda i, j, k: (i, j)),
            scratch_shapes=[pltpu.VMEM((tm, tn), jnp.float32)],
        ),
        compiler_params=pltpu.CompilerParams(
            dimension_semantics=("parallel", "parallel", "arbitrary")
        ),
        cost_estimate=pl.CostEstimate(
            flops=2 * M * K * N,
            transcendentals=0,
            bytes_accessed=4 * (M * K + K * N + M * N),
        ),
    )(xp, sp)
    return out[:M, :N]


# ----------------------------------------------------------------------------
# Public wrapper:  y = x @ scale
# ----------------------------------------------------------------------------

_VMEM_BUDGET = 12 * 1024 * 1024      # fits v5e's 16 MiB default scoped VMEM
_SCALE_RESIDENT_BUDGET = 6 * 1024 * 1024


def scale_layer_1d(x, scale):
    """torch.matmul(x, scale): scale is 1-D (K,) or 2-D (K, N); x is (..., K)."""
    out_dtype = jnp.result_type(x.dtype, scale.dtype)
    lead = x.shape[:-1]
    K = x.shape[-1]

    scale_1d = scale.ndim == 1
    if scale_1d:
        assert scale.shape[0] == K, f"contraction mismatch: x[..., {K}] @ scale[{scale.shape[0]}]"
        N = 1
    else:
        assert scale.ndim == 2 and scale.shape[0] == K, (
            f"contraction mismatch: x[..., {K}] @ scale{tuple(scale.shape)}"
        )
        N = scale.shape[1]

    M = math.prod(lead) if lead else 1
    x2 = x.reshape(M, K)

    # VMEM budget (f32 worst case): resident scale (x2 buffering) + streamed
    # x/out tiles (double-buffered).
    scale_resident_bytes = 2 * K * N * 4
    row_bytes = 2 * (K + N) * 4
    use_resident = (
        scale_resident_bytes <= _SCALE_RESIDENT_BUDGET
        and (_VMEM_BUDGET - scale_resident_bytes) // row_bytes >= 8
    )

    if use_resident:
        tm_cap = (_VMEM_BUDGET - scale_resident_bytes) // row_bytes
        tm = _pick_tm(M, tm_cap)
        Mp = _round_up(M, tm)

        xp = x2 if Mp == M else jnp.zeros((Mp, K), x2.dtype).at[:M].set(x2)

        if scale_1d:
            kernel = _scale_matvec_kernel
            s2 = scale.reshape(1, K)
            s_spec = pl.BlockSpec((1, K), lambda i: (0, 0))
        else:
            kernel = _scale_matmul_resident_kernel
            s2 = scale
            s_spec = pl.BlockSpec((K, N), lambda i: (0, 0))

        out = pl.pallas_call(
            kernel,
            out_shape=jax.ShapeDtypeStruct((Mp, N), out_dtype),
            grid_spec=pltpu.PrefetchScalarGridSpec(
                num_scalar_prefetch=0,
                grid=(Mp // tm,),
                in_specs=[
                    # NOTE: could add pipeline_mode=pl.Buffered(3) here if
                    # profiling ever shows exposed DMA on the x stream.
                    pl.BlockSpec((tm, K), lambda i: (i, 0)),
                    s_spec,
                ],
                out_specs=pl.BlockSpec((tm, N), lambda i: (i, 0)),
            ),
            compiler_params=pltpu.CompilerParams(
                dimension_semantics=("parallel",)
            ),
            cost_estimate=pl.CostEstimate(
                flops=2 * M * K * N,
                transcendentals=0,
                bytes_accessed=4 * (M * K + K * N + M * N),
            ),
        )(xp, s2)
        if Mp != M:
            out = out[:M]
    else:
        s2 = scale.reshape(K, 1) if scale_1d else scale
        out = _tiled_matmul_fallback(x2, s2, out_dtype)

    if scale_1d:
        # matmul with a 1-D rhs contracts and drops the last dimension.
        return out.reshape(lead)
    return out.reshape(*lead, N)


# ----------------------------------------------------------------------------
# Demo / self-test
# ----------------------------------------------------------------------------

if __name__ == "__main__":
    key = jax.random.PRNGKey(0)
    k1, k2, k3 = jax.random.split(key, 3)

    # C51-style usage: x = per-(batch, action) atom probabilities,
    # scale = 1-D distribution support.
    B, A, K_atoms = 2, 8, 51
    logits = jax.random.normal(k1, (B, A, K_atoms), dtype=jnp.float32)
    probs = jax.nn.softmax(logits, axis=-1)
    support = jnp.linspace(-10.0, 10.0, K_atoms, dtype=jnp.float32)

    q = jax.block_until_ready(scale_layer_1d(probs, support))
    q_ref = jnp.matmul(probs, support)
    assert q.shape == (B, A), q.shape
    assert jnp.allclose(q, q_ref, atol=1e-4, rtol=1e-4), "1-D scale mismatch vs reference"

    # General 2-D scale matrix (matmul semantics), non-128-aligned on purpose.
    Bm, S, K2, N2 = 2, 8, 32, 48
    x = jax.random.normal(k2, (Bm, S, K2), dtype=jnp.float32)
    scale2 = jax.random.normal(k3, (K2, N2), dtype=jnp.float32) * 0.1

    y = jax.block_until_ready(scale_layer_1d(x, scale2))
    y_ref = jnp.matmul(x, scale2)
    assert y.shape == (Bm, S, N2), y.shape
    assert jnp.allclose(y, y_ref, atol=1e-4, rtol=1e-4), "2-D scale mismatch vs reference"

    print("KERNEL_OK")
</pallas_src>

<mosaic_0001>
module attributes {stable_mosaic.version = 11 : i64} {
  func.func @_scale_matvec_kernel(%arg0: i32, %arg1: memref<8x51xf32, #tpu.memory_space<vmem>>, %arg2: memref<1x51xf32, #tpu.memory_space<vmem>>, %arg3: memref<8x1xf32, #tpu.memory_space<vmem>>) attributes {dimension_semantics = [#tpu.dimension_semantics<parallel>], iteration_bounds = array<i64: 2>, scalar_prefetch = 0 : i64, scratch_operands = 0 : i64, tpu.core_type = #tpu.core_type<tc>, window_params = [{transform_indices = @transform_0, window_bounds = array<i64: 8, 51>}, {pipeline_mode = #tpu.pipeline_mode<synchronous>, transform_indices = @transform_1, window_bounds = array<i64: 1, 51>}, {transform_indices = @transform_2, window_bounds = array<i64: 8, 1>}]} {
    %c0 = arith.constant 0 : index
    %c0_0 = arith.constant 0 : index
    %0 = vector.load %arg1[%c0, %c0_0] : memref<8x51xf32, #tpu.memory_space<vmem>>, vector<8x51xf32>
    %c0_1 = arith.constant 0 : index
    %c0_2 = arith.constant 0 : index
    %1 = vector.load %arg2[%c0_1, %c0_2] : memref<1x51xf32, #tpu.memory_space<vmem>>, vector<1x51xf32>
    %2 = vector.broadcast %1 : vector<1x51xf32> to vector<8x51xf32>
    %3 = arith.mulf %0, %2 : vector<8x51xf32>
    %cst = arith.constant dense<0.000000e+00> : vector<8xf32>
    %4 = vector.multi_reduction <add>, %3, %cst [1] : vector<8x51xf32> to vector<8xf32>
    %5 = vector.shape_cast %4 : vector<8xf32> to vector<8x1xf32>
    %c0_3 = arith.constant 0 : index
    %c0_4 = arith.constant 0 : index
    %6 = vector.load %arg3[%c0_3, %c0_4] : memref<8x1xf32, #tpu.memory_space<vmem>>, vector<8x1xf32>
    tpu.vector_store %arg3[%c0_3, %c0_4], %5 {strides = array<i32>} : memref<8x1xf32, #tpu.memory_space<vmem>>, vector<8x1xf32>,
    return
  }
  func.func @transform_0(%arg0: i32) -> (i32, i32) {
    %c0_i32 = arith.constant 0 : i32
    %c0_i32_0 = arith.constant 0 : i32
    return %arg0, %c0_i32 : i32, i32
  }
  func.func @transform_1(%arg0: i32) -> (i32, i32) {
    %c0_i32 = arith.constant 0 : i32
    %c0_i32_0 = arith.constant 0 : i32
    %c0_i32_1 = arith.constant 0 : i32
    return %c0_i32, %c0_i32_0 : i32, i32
  }
  func.func @transform_2(%arg0: i32) -> (i32, i32) {
    %c0_i32 = arith.constant 0 : i32
    %c0_i32_0 = arith.constant 0 : i32
    return %arg0, %c0_i32 : i32, i32
  }
}

</mosaic_0001>

<bundles_post_ra>
// kernel: tpu_custom_call.1
= control target key start
LH: loop header
LB: loop body
LE: loop exit
PB: predicated region body
PF: predicated region fallthrough
CT: control target
= control target key end

     0   :  { %7 = vsyncpa [#allocation3], 0  ;;  %s472_s0 = inlined_call_operand.hbm [shape: f32[16,51], index: 0, kind: input, shape index: {}]   ;;  %s473_s1 = inlined_call_operand.vmem [shape: f32[1,51], index: 1, kind: input, shape index: {}]   ;;  %s474_s2 = inlined_call_operand.vmem [shape: f32[16,1], index: 2, kind: output, shape index: {}]  }
   0x1   :  { %9 = vsyncpa [#allocation3 + $0x1], 0  ;;  %s369_s9 = smov 0   ;;  %s371_s10 = smov 0  }
   0x2   :  { %s373_s11 = smov 0   ;;  %s375_s12 = smov 0  }
   0x3 LB: > { %s388_s13 = sadd.s32 4294967295, %s351_s12   ;;  %s391_s14 = sadd.s32 1, %s351_s12   ;;  %s351_s12 = sphi %s375_s12, %s484_s12   ;;  %s347_s11 = sphi %s373_s11, %s483_s11   ;;  %s343_s10 = sphi %s371_s10, %s482_s10   ;;  %s339_s9 = sphi %s369_s9, %s481_s9  }
   0x4   : > { %s19_s15 = ssub.s32 %s351_s12, %s391_s14  ;;  %s22_s16 = sadd.s32 1, %s347_s11 }
   0x5   : > { %p20_p0 = scmp.eq.s32.totalorder %s19_s15, 0  ;;  %p29_p1 = scmp.ne.s32.totalorder %s347_s11, %s343_s10 }
   0x6   : > { %p30_p2 = scmp.eq.s32.totalorder %s351_s12, 0  ;;  %p35_p3 = scmp.ne.s32.totalorder %s343_s10, %s339_s9 }
   0x7   : > { %s401_s17 = scalar_select %p20_p0, %s347_s11, %s22_s16  }
   0x8   : > { %p31_p4 = por %p30_p2, %p29_p1  ;;  %p36_p5 = scmp.eq.s32.totalorder %s388_s13, 0 }
   0x9   : > { %p256_p6 = scmp.lt.s32.totalorder %s351_s12, 2  ;;  %s109_s19 = sand.u32 1, %s347_s11  }
   0xa   : > { %p405_p7 = por %p36_p5, %p35_p3  ;;  %s242_s20 = sshll.u32 %s109_s19, 3 }
   0xb   : > { %s243_s21 = sshll.u32 %s351_s12, 7  ;;  %s113_s25 = scalar_lea.vmem [#allocation2], %s242_s20 }
   0xc   : > { %s476_s18 = scalar_select %p405_p7, 1, 0 }
   0xd   : > { %s414_s24 = scalar_lea.hbm %s472_s0, %s243_s21  ;;  %s120_s26 = sshll.u32 %s113_s25, 4  ;;  %s416_s26 = int_to_ptr.vmem [resolvable:$true] %s120_s26 }
   0xe   : > { %p418_p8 = pnand %p256_p6, %p31_p4  ;;  %s110_s28 = scalar_lea.sflag [#allocation3], %s109_s19 }
   0xf   : > { %s289_s29 = scalar_lea.hbm %s414_s24, 128  ;;  %s294_s4 = scalar_lea.hbm %s472_s0, 256 }
  0x10   : > { %p290_p11 = scmp.ne.s32.totalorder %s414_s24, %s289_s29  ;;  %p291_p12 = pneg %p418_p8 }
  0x11   : > { %p295_p1 = scmp.lt.s32.totalorder %s414_s24, %s472_s0  ;;  %p296_p2 = scmp.lt.s32.totalorder %s294_s4, %s289_s29 }
  0x12   : > { %p292_p13 = pnand %p291_p12, %p290_p11 }
  0x13   : > { %p297_p3 = por %p296_p2, %p295_p1 }
  0x14   : > { %p293_p0 = pneg %p292_p13 }
  0x16   : > { %p298_p4 = pnand %p297_p3, %p293_p0 }
  0x18   : > { %301 = shalt.err (!%p298_p4)
}
  0x19   : > { %s302_s7 = scalar_lea.vmem %s416_s26, 128  ;;  %s353_s8 = smov [#allocation2]  }
  0x1a   : > { %p303_p5 = scmp.ne.s32.totalorder %s416_s26, %s302_s7  ;;  %s307_s9 = sshll.u32 %s353_s8, 4  ;;  %s308_s9 = int_to_ptr.vmem [resolvable:$false] %s307_s9 }
  0x1b   : > { %s309_s15 = scalar_lea.vmem %s308_s9, 256  ;;  %p310_p13 = scmp.lt.s32.totalorder %s416_s26, %s308_s9 }
  0x1c   : > { %p305_p6 = pnand %p303_p5, %p291_p12  ;;  %p311_p9 = scmp.lt.s32.totalorder %s309_s15, %s302_s7 }
  0x1e   : > { %p306_p11 = pneg %p305_p6  ;;  %p312_p10 = por %p311_p9, %p310_p13 }
  0x20   : > { %p313_p7 = pnand %p312_p10, %p306_p11 }
  0x22   : > { %316 = shalt.err (!%p313_p7)
}
  0x23   : > { %255 = dma.hbm_to_vmem [thread:$0]  (!%p418_p8), %s414_s24, 128, %s416_s26, %s110_s28  }
  0x24   : > { %p478_p0 = scmp.lt.s32.totalorder %s351_s12, 3  ;;  %p479_p1 = scmp.ge.s32.totalorder %s351_s12, 1 }
  0x26   : > { %p126_p12 = pnand %p479_p1, %p478_p0 }
  0x27   : > { %s131_s16 = sand.u32 (!%p126_p12), 1, %s343_s10   ;;  %p480_p9 = scmp.ne.s32.totalorder (!%p126_p12), %s476_s18, 0 }
  0x28   : > { %129 = sbr.rel (%p126_p12) target bundleno = 190 (0xbe), region = 28  ;;  %s245_s19 = sshll.u32 (!%p126_p12), %s131_s16, 3 }
  0x29   : > { %s132_s20 = scalar_lea.sflag (!%p126_p12), [#allocation3], %s131_s16  ;;  %s135_s21 = scalar_lea.vmem (!%p126_p12), [#allocation2], %s245_s19 }
  0x2d   : > { %334 = dma.done.wait (%p480_p9), %s132_s20, 128  }
  0x2e   : > { %336 = vsyncadd (%p480_p9), %s132_s20, 4294967168  ;;  %v159_v0 = vld [vmem:[%s135_s21] sm:$0xff]  ;;  %vm168_vm0 = vcmask 416768   ;;  %p155_p7 = scmp.lt.s32.totalorder %s388_s13, 1  ;;  %vm172_vm1 = vcmask 7168  }
  0x2f   : > { %v247_v1 = vld [vmem:[%s473_s1] ss:$0 sm:$0xff] }
  0x30   : > { %v167_v2 = vmul.f32 %v247_v1, %v159_v0  ;;  %s486_s13 = smov (!%p155_p7, %s388_s13), 1 }
  0x31   : > { %s246_s12 = sshll.u32 %s486_s13, 3 }
  0x32   : > { %v169_v3 = vsel %vm168_vm0, %v167_v2, 0.0  ;;  %s158_s26 = scalar_lea.vmem %s474_s2, %s246_s12 }
  0x33   : > { %170 = vadd.xlane.f32.xlu0 %v169_v3 }
  0xbc   : > { %v171_v4 = vpop.xlane.xlu0 %170 }
  0xbd   : > { %173 = vst.msk [vmem:[%s158_s26] sm:$0xff] %vm172_vm1, %v171_v4 }
  0xbe PF: > { %p12_p8 = scmp.ge.s32.totalorder %s391_s14, 4   ;;  %s481_s9 = smov %s343_s10 }
  0xbf   : > { %s482_s10 = smov %s347_s11  ;;  %s483_s11 = smov %s401_s17 }
  0xc0   : > { %s484_s12 = smov %s391_s14  ;;  %14 = sbr.rel (!%p12_p8) target bundleno = 3 (0x3), region = 68 }
  0xc5   :  { %193 = vsyncpa [#allocation3], 1 }
  0xc6   :  { %195 = vsyncpa [#allocation3 + $0x1], 1 }

</bundles_post_ra>
